<compile_context>
chip_gen: v6e
topology: v6e:2x2x1
jax: 0.10.0
libtpu: 0.0.40
codegen_flags: <defaults>
</compile_context>

<pallas_src>
import jax
import jax.numpy as jnp
from jax.experimental import pallas as pl
from jax.experimental.pallas import tpu as pltpu


def _identity_copy_kernel(x_ref, o_ref):
    # Straight tile copy: VMEM in -> VMEM out; pipeline handles HBM DMA.
    o_ref[...] = x_ref[...]


_LANE_CHOICES = (1024, 512, 256, 128)   # prefer wide, lane-dense last dim
_SUBLANE = 8
# Per-block byte budget.  With double-buffered input + output blocks this is
# ~4 * _MAX_BLOCK_BYTES of VMEM, comfortably inside v7x's 64 MiB (and v5e/v6e).
_MAX_BLOCK_BYTES = 4 * 1024 * 1024


def _choose_layout(total_elems, itemsize):
    """Pick a lane-dense 2D factorization (rows, lanes) and a row tile size."""
    for lanes in _LANE_CHOICES:
        if total_elems % lanes != 0:
            continue
        rows = total_elems // lanes
        max_rows_by_bytes = max(_SUBLANE, _MAX_BLOCK_BYTES // (lanes * itemsize))
        best = None
        r = _SUBLANE
        limit = min(rows, max_rows_by_bytes)
        while r <= limit:
            if rows % r == 0:
                best = r           # largest multiple-of-8 divisor within budget
            r += _SUBLANE
        if best is not None:
            return rows, lanes, best
        # rows < 8 or no multiple-of-8 divisor: fall back to one full block
        # (block_shape == full array dims always satisfies TPU tiling rules).
        return rows, lanes, rows
    return None


def identity_core_forward(x):
    """Pallas equivalent of IdentityCore.forward: returns x unchanged."""
    orig_shape = x.shape
    total = x.size
    if total == 0:
        return x

    layout = _choose_layout(total, x.dtype.itemsize)
    if layout is None:
        # Odd element count not divisible by 128: single whole-array block.
        return pl.pallas_call(
            _identity_copy_kernel,
            out_shape=jax.ShapeDtypeStruct(x.shape, x.dtype),
        )(x)

    rows, lanes, tile_rows = layout
    x2 = x.reshape(rows, lanes)
    grid = (rows // tile_rows,)

    out2 = pl.pallas_call(
        _identity_copy_kernel,
        out_shape=jax.ShapeDtypeStruct((rows, lanes), x.dtype),
        grid=grid,
        in_specs=[pl.BlockSpec((tile_rows, lanes), lambda i: (i, 0))],
        out_specs=pl.BlockSpec((tile_rows, lanes), lambda i: (i, 0)),
        compiler_params=pltpu.CompilerParams(
            dimension_semantics=("parallel",),
            vmem_limit_bytes=64 * 1024 * 1024,
        ),
    )(x2)
    return out2.reshape(orig_shape)


if __name__ == "__main__":
    key = jax.random.PRNGKey(0)

    # Small shape consistent with the module (identity accepts any tensor):
    # batch=2, channels=4, spatial 16x16.
    x = jax.random.normal(key, (2, 4, 16, 16), dtype=jnp.float32)

    out = identity_core_forward(x)
    out = jax.block_until_ready(out)

    assert out.shape == x.shape
    assert out.dtype == x.dtype
    assert jnp.array_equal(out, x)

    # Also exercise the multi-block (tiled, pipelined) path once.
    x_big = jax.random.normal(key, (64, 8, 32, 32), dtype=jnp.float32)
    out_big = jax.block_until_ready(identity_core_forward(x_big))
    assert jnp.array_equal(out_big, x_big)

    print("KERNEL_OK")
</pallas_src>

<mosaic_0001>
module attributes {stable_mosaic.version = 11 : i64} {
  func.func @_identity_copy_kernel(%arg0: i32, %arg1: memref<2x1024xf32, #tpu.memory_space<vmem>>, %arg2: memref<2x1024xf32, #tpu.memory_space<vmem>>) attributes {dimension_semantics = [#tpu.dimension_semantics<parallel>], iteration_bounds = array<i64: 1>, scalar_prefetch = 0 : i64, scratch_operands = 0 : i64, tpu.core_type = #tpu.core_type<tc>, window_params = [{transform_indices = @transform_0, window_bounds = array<i64: 2, 1024>}, {transform_indices = @transform_1, window_bounds = array<i64: 2, 1024>}]} {
    %c0 = arith.constant 0 : index
    %c0_0 = arith.constant 0 : index
    %0 = vector.load %arg1[%c0, %c0_0] : memref<2x1024xf32, #tpu.memory_space<vmem>>, vector<2x1024xf32>
    %c0_1 = arith.constant 0 : index
    %c0_2 = arith.constant 0 : index
    %1 = vector.load %arg2[%c0_1, %c0_2] : memref<2x1024xf32, #tpu.memory_space<vmem>>, vector<2x1024xf32>
    tpu.vector_store %arg2[%c0_1, %c0_2], %0 {strides = array<i32>} : memref<2x1024xf32, #tpu.memory_space<vmem>>, vector<2x1024xf32>,
    return
  }
  func.func @transform_0(%arg0: i32) -> (i32, i32) {
    %c0_i32 = arith.constant 0 : i32
    %c0_i32_0 = arith.constant 0 : i32
    return %arg0, %c0_i32 : i32, i32
  }
  func.func @transform_1(%arg0: i32) -> (i32, i32) {
    %c0_i32 = arith.constant 0 : i32
    %c0_i32_0 = arith.constant 0 : i32
    return %arg0, %c0_i32 : i32, i32
  }
}

</mosaic_0001>

<bundles_post_ra>
// kernel: tpu_custom_call.1
= control target key start
LH: loop header
LB: loop body
LE: loop exit
PB: predicated region body
PF: predicated region fallthrough
CT: control target
= control target key end

     0   :  { %6 = vsyncpa [#allocation3], 0  ;;  %s104_s0 = inlined_call_operand.hbm [shape: f32[2,1024], index: 0, kind: input, shape index: {}]   ;;  %s105_s1 = inlined_call_operand.hbm [shape: f32[2,1024], index: 1, kind: output, shape index: {}]  }
   0x1   :  { %7 = vsyncpa [#allocation4], 0  ;;  %s86_s6 = smov [#allocation2]  }
   0x2   :  { %s14_s7 = sshll.u32 %s86_s6, 4  ;;  %s15_s7 = int_to_ptr.vmem [resolvable:$true] %s14_s7 }
   0x3   :  { %s50_s8 = scalar_lea.vmem %s15_s7, 256  ;;  %p55_p1 = scmp.lt.s32.totalorder %s15_s7, %s15_s7 }
   0x4   :  { %p51_p0 = scmp.ne.s32.totalorder %s15_s7, %s50_s8  ;;  %p56_p2 = scmp.lt.s32.totalorder %s50_s8, %s50_s8 }
   0x6   :  { %p57_p3 = por %p56_p2, %p55_p1 }
   0x8   :  { %p58_p4 = pnand %p57_p3, %p51_p0 }
   0xa   :  { %61 = shalt.err (!%p58_p4)
}
   0xb   :  { %17 = dma.hbm_to_vmem [thread:$0]  %s104_s0, 256, %s15_s7, [#allocation3]  }
   0xc   :  { %82 = dma.done.wait [#allocation3], 256  }
   0xd   :  { %83 = vsyncadd [#allocation3], 4294967040  ;;  %s87_s11 = smov [#allocation5]   ;;  %v21_v0 = vld [vmem:[#allocation2] sm:$0xff]  ;;  %v22_v1 = vld [vmem:[#allocation2 + $0x8] sm:$0xff] }
   0xe   :  { %s31_s12 = sshll.u32 %s87_s11, 4  ;;  %23 = vst [vmem:[#allocation5] sm:$0xff] %v21_v0  ;;  %24 = vst [vmem:[#allocation5 + $0x8] sm:$0xff] %v22_v1  ;;  %s32_s12 = int_to_ptr.vmem [resolvable:$true] %s31_s12 }
   0xf   :  { %s62_s13 = scalar_lea.vmem %s32_s12, 256  ;;  %p67_p6 = scmp.lt.s32.totalorder %s32_s12, %s32_s12 }
  0x10   :  { %p63_p5 = scmp.ne.s32.totalorder %s32_s12, %s62_s13  ;;  %p68_p7 = scmp.lt.s32.totalorder %s62_s13, %s62_s13 }
  0x12   :  { %p69_p8 = por %p68_p7, %p67_p6 }
  0x14   :  { %p70_p9 = pnand %p69_p8, %p63_p5 }
  0x16   :  { %73 = shalt.err (!%p70_p9)
}
  0x17   :  { %34 = dma.vmem_to_hbm [thread:$0]  %s32_s12, 256, %s105_s1, [#allocation4]  }
  0x18   :  { %84 = dma.done.wait [#allocation4], 256  }
  0x19   :  { %85 = vsyncadd [#allocation4], 4294967040 }
  0x1a   :  { %38 = vsyncpa [#allocation3], 1 }
  0x1b   :  { %39 = vsyncpa [#allocation4], 1 }

</bundles_post_ra>
